<compile_context>
chip_gen: v7x
topology: tpu7x:2x2x1
jax: 0.10.0
libtpu: 0.0.40
codegen_flags: <defaults>
</compile_context>

<pallas_src>
import math

import jax
import jax.numpy as jnp
import numpy as np
from jax.experimental import pallas as pl
from jax.experimental.pallas import tpu as pltpu

_LANES = 128
_INV_LN2 = 1.0 / math.log(2.0)


def _entropy_partial_kernel(x_ref, o_ref):
    # x_ref: (tile_rows, 128) block of the flattened probability stream.
    x = x_ref[...].astype(jnp.float32)
    tiny = jnp.float32(np.finfo(np.float32).tiny)
    # x * log(x) with 0*log(0) == 0 (matches torch's -inf -> 0 masking for
    # softmax outputs; negative inputs are outside the module's contract).
    contrib = x * jnp.log(jnp.maximum(x, tiny))            # EUP log + VPU mul
    tr = x.shape[0]
    # Collapse sublane groups onto one (8,128) vreg with plain VPU adds; the
    # cross-lane (XLU) reduction is deferred to the wrapper finalize.
    o_ref[...] = jnp.sum(contrib.reshape(tr // 8, 8, _LANES), axis=0)


def _round_up(x: int, m: int) -> int:
    return ((x + m - 1) // m) * m


def entropy(inputs: jax.Array, *, max_tile_rows: int = 8192) -> jax.Array:
    """Pallas equivalent of Entropy().forward(inputs).

    inputs: (B, C, ...) softmax probabilities (dim=1 is the class dim, as in
    the PyTorch module). float32 or bfloat16.
    """
    assert inputs.ndim >= 2, "expected at least (B, C) softmaxed inputs"
    n = int(np.prod(inputs.shape))
    # Number of samples the torch module averages over: everything but dim 1.
    divisor = n // inputs.shape[1]

    # Sublane granularity depends on element width (8 for f32, 16 for bf16).
    itemsize = jnp.dtype(inputs.dtype).itemsize
    sublane = max(8, 32 // itemsize)

    rows = -(-n // _LANES)                      # cdiv to lane-dense rows
    rows = _round_up(rows, sublane)
    tile_rows = min(_round_up(max_tile_rows, sublane), rows)
    num_tiles = -(-rows // tile_rows)
    rows_padded = num_tiles * tile_rows

    flat = inputs.reshape(-1)
    pad = rows_padded * _LANES - n
    if pad:
        # Zero padding contributes nothing to the sum (0 * log(0) == 0).
        flat = jnp.pad(flat, (0, pad))
    x2 = flat.reshape(rows_padded, _LANES)

    partials = pl.pallas_call(
        _entropy_partial_kernel,
        out_shape=jax.ShapeDtypeStruct((num_tiles * 8, _LANES), jnp.float32),
        grid_spec=pltpu.PrefetchScalarGridSpec(
            num_scalar_prefetch=0,
            grid=(num_tiles,),
            in_specs=[pl.BlockSpec((tile_rows, _LANES), lambda i: (i, 0))],
            out_specs=pl.BlockSpec((8, _LANES), lambda i: (i, 0)),
        ),
        compiler_params=pltpu.CompilerParams(
            dimension_semantics=("parallel",),
            vmem_limit_bytes=32 * 1024 * 1024,
        ),
    )(x2)

    # Finalize in the wrapper: single cross-lane reduce + hoisted scales.
    total = jnp.sum(partials)
    return (-jnp.float32(_INV_LN2) / jnp.float32(divisor)) * total


def entropy_ref(inputs: jax.Array) -> jax.Array:
    """Pure-JAX reference matching the PyTorch module exactly (2-D case)."""
    logp = jnp.log(inputs)
    logp = jnp.where(jnp.isneginf(logp), 0.0, logp)
    return -jnp.sum(inputs * logp / np.log(2.0), axis=1).mean()


if __name__ == "__main__":
    key = jax.random.PRNGKey(0)
    k1, k2 = jax.random.split(key)

    # --- small single-tile case, with exact zeros (0*log(0) path) ---
    B, C = 8, 16
    logits = jax.random.normal(k1, (B, C), dtype=jnp.float32)
    probs = jax.nn.softmax(logits, axis=1)
    probs = probs.at[:, 0].set(0.0)
    probs = probs / jnp.sum(probs, axis=1, keepdims=True)

    got = jax.block_until_ready(entropy(probs))
    want = jax.block_until_ready(entropy_ref(probs))
    np.testing.assert_allclose(np.asarray(got), np.asarray(want),
                               rtol=1e-5, atol=1e-5)

    # --- multi-tile ("parallel" grid > 1) + ragged-tail padding path ---
    B2, C2 = 32, 100
    probs2 = jax.nn.softmax(jax.random.normal(k2, (B2, C2), jnp.float32), axis=1)
    got2 = jax.block_until_ready(entropy(probs2, max_tile_rows=8))
    want2 = jax.block_until_ready(entropy_ref(probs2))
    np.testing.assert_allclose(np.asarray(got2), np.asarray(want2),
                               rtol=1e-5, atol=1e-5)

    # --- bf16 input path (upcast happens inside the kernel) ---
    got3 = jax.block_until_ready(entropy(probs.astype(jnp.bfloat16)))
    np.testing.assert_allclose(np.asarray(got3), np.asarray(want),
                               rtol=3e-2, atol=3e-2)

    print("KERNEL_OK")
</pallas_src>

<mosaic_0001>
module attributes {stable_mosaic.version = 11 : i64} {
  func.func @_entropy_partial_kernel(%arg0: i32, %arg1: memref<8x128xf32, #tpu.memory_space<vmem>>, %arg2: memref<8x128xf32, #tpu.memory_space<vmem>>) attributes {dimension_semantics = [#tpu.dimension_semantics<parallel>], iteration_bounds = array<i64: 1>, scalar_prefetch = 0 : i64, scratch_operands = 0 : i64, tpu.core_type = #tpu.core_type<tc>, window_params = [{transform_indices = @transform_0, window_bounds = array<i64: 8, 128>}, {transform_indices = @transform_1, window_bounds = array<i64: 8, 128>}]} {
    %c0 = arith.constant 0 : index
    %c0_0 = arith.constant 0 : index
    %0 = vector.load %arg1[%c0, %c0_0] : memref<8x128xf32, #tpu.memory_space<vmem>>, vector<8x128xf32>
    %cst = arith.constant 1.17549435E-38 : f32
    %1 = vector.broadcast %cst : f32 to vector<8x128xf32>
    %2 = arith.maximumf %0, %1 : vector<8x128xf32>
    %3 = math.log %2 : vector<8x128xf32>
    %4 = arith.mulf %0, %3 : vector<8x128xf32>
    %5 = vector.shape_cast %4 : vector<8x128xf32> to vector<1x8x128xf32>
    %cst_1 = arith.constant dense<0.000000e+00> : vector<8x128xf32>
    %6 = vector.multi_reduction <add>, %5, %cst_1 [0] : vector<1x8x128xf32> to vector<8x128xf32>
    %c0_2 = arith.constant 0 : index
    %c0_3 = arith.constant 0 : index
    %7 = vector.load %arg2[%c0_2, %c0_3] : memref<8x128xf32, #tpu.memory_space<vmem>>, vector<8x128xf32>
    tpu.vector_store %arg2[%c0_2, %c0_3], %6 {strides = array<i32>} : memref<8x128xf32, #tpu.memory_space<vmem>>, vector<8x128xf32>,
    return
  }
  func.func @transform_0(%arg0: i32) -> (i32, i32) {
    %c0_i32 = arith.constant 0 : i32
    %c0_i32_0 = arith.constant 0 : i32
    return %arg0, %c0_i32 : i32, i32
  }
  func.func @transform_1(%arg0: i32) -> (i32, i32) {
    %c0_i32 = arith.constant 0 : i32
    %c0_i32_0 = arith.constant 0 : i32
    return %arg0, %c0_i32 : i32, i32
  }
}

</mosaic_0001>

<bundles_post_ra>
// kernel: tpu_custom_call.1
= control target key start
LH: loop header
LB: loop body
LE: loop exit
PB: predicated region body
PF: predicated region fallthrough
CT: control target
= control target key end

     0   :  { %6 = vsyncpa [#allocation3], 0  ;;  %s131_s0 = inlined_call_operand.hbm [shape: f32[8,128], index: 0, kind: input, shape index: {}]   ;;  %s132_s1 = inlined_call_operand.hbm [shape: f32[8,128], index: 1, kind: output, shape index: {}]  }
   0x1   :  { %7 = vsyncpa [#allocation4], 0  ;;  %s95_s6 = smov [#allocation2]   ;;  %s47_s10 = scalar_lea.hbm %s131_s0, 128 }
   0x2   :  { %s14_s7 = sshll.u32 %s95_s6, 4  ;;  %p48_p0 = scmp.ne.s32.totalorder %s131_s0, %s47_s10  ;;  %s15_s7 = int_to_ptr.vmem [resolvable:$true] %s14_s7 }
   0x3   :  { %p51_p1 = scmp.lt.u32.totalorder %s47_s10, %s131_s0 }
   0x5   :  { %p53_p2 = pnand %p51_p1, %p48_p0 }
   0x7   :  { %56 = shalt.err (!%p53_p2)
}
   0x8   :  { %s57_s15 = scalar_lea.vmem %s15_s7, 128  ;;  %p62_p4 = scmp.lt.s32.totalorder %s15_s7, %s15_s7 }
   0x9   :  { %p58_p3 = scmp.ne.s32.totalorder %s15_s7, %s57_s15  ;;  %p63_p5 = scmp.lt.s32.totalorder %s57_s15, %s57_s15 }
   0xb   :  { %p64_p6 = por %p63_p5, %p62_p4 }
   0xd   :  { %p65_p7 = pnand %p64_p6, %p58_p3 }
   0xf   :  { %68 = shalt.err (!%p65_p7)
}
  0x10   :  { %17 = dma.hbm_to_vmem [thread:$0]  %s131_s0, 128, %s15_s7, [#allocation3]  }
  0x11   :  { %91 = dma.done.wait [#allocation3], 128  }
  0x12   :  { %92 = vsyncadd [#allocation3], 4294967168  ;;  %v21_v0 = vld [vmem:[#allocation2] sm:$0xff]  ;;  %s96_s18 = smov [#allocation5]  }
  0x13   :  { %v22_v1 = vmax.f32 %v21_v0, 1.1754944e-38  ;;  %s34_s19 = sshll.u32 %s96_s18, 4  ;;  %s35_s19 = int_to_ptr.vmem [resolvable:$true] %s34_s19 }
  0x14   :  { %s69_s20 = scalar_lea.vmem %s35_s19, 128  ;;  %p74_p9 = scmp.lt.s32.totalorder %s35_s19, %s35_s19 }
  0x15   :  { %45 = vlog2.f32 %v22_v1  ;;  %p70_p8 = scmp.ne.s32.totalorder %s35_s19, %s69_s20  ;;  %p75_p10 = scmp.lt.s32.totalorder %s69_s20, %s69_s20 }
  0x17   :  { %p76_p11 = por %p75_p10, %p74_p9 }
  0x19   :  { %p77_p12 = pnand %p76_p11, %p70_p8 }
  0x1f   :  { %v46_v2 = vpop.eup %45 }
  0x20   :  { %v24_v3 = vmul.f32 0.6931472, %v46_v2 }
  0x22   :  { %v25_v4 = vmul.f32 %v24_v3, %v21_v0 }
  0x24   :  { %27 = vst [vmem:[#allocation5] sm:$0xff] %v25_v4 }
  0x25   :  { %80 = shalt.err (!%p77_p12)
}
  0x26   :  { %s81_s22 = scalar_lea.hbm %s132_s1, 128 }
  0x27   :  { %p82_p13 = scmp.ne.s32.totalorder %s132_s1, %s81_s22  ;;  %p85_p0 = scmp.lt.u32.totalorder %s81_s22, %s132_s1 }
  0x29   :  { %p87_p1 = pnand %p85_p0, %p82_p13 }
  0x2b   :  { %90 = shalt.err (!%p87_p1)
}
  0x2c   :  { %37 = dma.vmem_to_hbm [thread:$0]  %s35_s19, 128, %s132_s1, [#allocation4]  }
  0x2d   :  { %93 = dma.done.wait [#allocation4], 128  }
  0x2e   :  { %94 = vsyncadd [#allocation4], 4294967168 }
  0x2f   :  { %41 = vsyncpa [#allocation3], 1 }
  0x30   :  { %42 = vsyncpa [#allocation4], 1 }

</bundles_post_ra>
